<compile_context>
chip_gen: v5e
topology: v5e:2x2
jax: 0.10.0
libtpu: 0.0.40
codegen_flags: <defaults>
</compile_context>

<pallas_src>
import jax
import jax.numpy as jnp
from jax import lax
from jax.experimental import pallas as pl
from jax.experimental.pallas import tpu as pltpu


def scatter_dim0_kernel(idx_ref, val_ref, data_ref, out_ref):
    """out[0, j] = values[k] if indices[k] == j (last k wins) else data[0, j]."""
    n = out_ref.shape[-1]
    lane = lax.broadcasted_iota(jnp.int32, (1, n), 1)   # lane[0, j] = j
    out = data_ref[...]                                 # (1, N), a single vreg here

    # K is tiny and static -> fully unrolled select chain on the VPU,
    # scalar operands come straight from SMEM.
    k_count = idx_ref.shape[0]
    for k in range(k_count):
        v = val_ref[k].astype(out_ref.dtype)            # preserve input dtype
        out = jnp.where(lane == idx_ref[k], v, out)

    out_ref[...] = out


def scatter_dim0(data, indices, values):
    """JAX equivalent of torch `data.scatter_(0, indices, values)` for 1-D data."""
    n = data.shape[0]
    data_row = data.reshape(1, n)                       # layout-only, no copy of note
    idx = indices.astype(jnp.int32)
    val = values.astype(jnp.float32)

    out = pl.pallas_call(
        scatter_dim0_kernel,
        out_shape=jax.ShapeDtypeStruct((1, n), data.dtype),
        in_specs=[
            pl.BlockSpec(memory_space=pltpu.MemorySpace.SMEM),  # indices (K,)
            pl.BlockSpec(memory_space=pltpu.MemorySpace.SMEM),  # values  (K,)
            pl.BlockSpec((1, n), lambda: (0, 0)),               # data row (VMEM, full array)
        ],
        out_specs=pl.BlockSpec((1, n), lambda: (0, 0)),
        input_output_aliases={2: 0},                    # in-place scatter_ semantics
    )(idx, val, data_row)

    return out.reshape(n)


class ConvTranspose2dModel:
    """Mirror of the PyTorch module: no parameters; forward scatters constants."""

    def __init__(self):
        pass

    def forward(self, data):
        indices = jnp.array([0, 2, 1, 3], dtype=jnp.int32)
        values = jnp.array([10.0, 20.0, 30.0, 40.0], dtype=jnp.float32)
        return scatter_dim0(data, indices, values)


if __name__ == "__main__":
    # Deterministic input with the same shape as torch.tensor([1., 2., 3., 4.]).
    key = jax.random.PRNGKey(0)
    data = jax.random.normal(key, (4,), dtype=jnp.float32) + jnp.array(
        [1.0, 2.0, 3.0, 4.0], dtype=jnp.float32
    )

    model = ConvTranspose2dModel()
    out = model.forward(data)
    out = jax.block_until_ready(out)

    # Reference semantics: data[[0,2,1,3]] = [10,20,30,40] -> [10, 30, 20, 40]
    expected = jnp.array([10.0, 30.0, 20.0, 40.0], dtype=jnp.float32)
    assert out.shape == (4,), out.shape
    assert out.dtype == data.dtype, (out.dtype, data.dtype)
    assert jnp.allclose(out, expected), (out, expected)

    print("KERNEL_OK")
</pallas_src>

<mosaic_0001>
module attributes {stable_mosaic.version = 11 : i64} {
  func.func @scatter_dim0_kernel(%arg0: memref<4xi32, #tpu.memory_space<smem>>, %arg1: memref<4xf32, #tpu.memory_space<smem>>, %arg2: memref<1x4xf32, #tpu.memory_space<vmem>>, %arg3: memref<1x4xf32, #tpu.memory_space<vmem>>) attributes {dimension_semantics = [], scalar_prefetch = 0 : i64, scratch_operands = 0 : i64, tpu.core_type = #tpu.core_type<tc>} {
    %0 = tpu.iota {dimensions = array<i32: 1>} : vector<1x4xi32>
    %c0 = arith.constant 0 : index
    %c0_0 = arith.constant 0 : index
    %1 = vector.load %arg2[%c0, %c0_0] : memref<1x4xf32, #tpu.memory_space<vmem>>, vector<1x4xf32>
    %c0_1 = arith.constant 0 : index
    %2 = memref.load %arg1[%c0_1] : memref<4xf32, #tpu.memory_space<smem>>
    %c0_2 = arith.constant 0 : index
    %3 = memref.load %arg0[%c0_2] : memref<4xi32, #tpu.memory_space<smem>>
    %4 = vector.broadcast %3 : i32 to vector<1x4xi32>
    %5 = arith.cmpi eq, %0, %4 : vector<1x4xi32>
    %6 = vector.broadcast %2 : f32 to vector<1x4xf32>
    %7 = arith.select %5, %6, %1 : vector<1x4xi1>, vector<1x4xf32>
    %c1 = arith.constant 1 : index
    %8 = memref.load %arg1[%c1] : memref<4xf32, #tpu.memory_space<smem>>
    %c1_3 = arith.constant 1 : index
    %9 = memref.load %arg0[%c1_3] : memref<4xi32, #tpu.memory_space<smem>>
    %10 = vector.broadcast %9 : i32 to vector<1x4xi32>
    %11 = arith.cmpi eq, %0, %10 : vector<1x4xi32>
    %12 = vector.broadcast %8 : f32 to vector<1x4xf32>
    %13 = arith.select %11, %12, %7 : vector<1x4xi1>, vector<1x4xf32>
    %c2 = arith.constant 2 : index
    %14 = memref.load %arg1[%c2] : memref<4xf32, #tpu.memory_space<smem>>
    %c2_4 = arith.constant 2 : index
    %15 = memref.load %arg0[%c2_4] : memref<4xi32, #tpu.memory_space<smem>>
    %16 = vector.broadcast %15 : i32 to vector<1x4xi32>
    %17 = arith.cmpi eq, %0, %16 : vector<1x4xi32>
    %18 = vector.broadcast %14 : f32 to vector<1x4xf32>
    %19 = arith.select %17, %18, %13 : vector<1x4xi1>, vector<1x4xf32>
    %c3 = arith.constant 3 : index
    %20 = memref.load %arg1[%c3] : memref<4xf32, #tpu.memory_space<smem>>
    %c3_5 = arith.constant 3 : index
    %21 = memref.load %arg0[%c3_5] : memref<4xi32, #tpu.memory_space<smem>>
    %22 = vector.broadcast %21 : i32 to vector<1x4xi32>
    %23 = arith.cmpi eq, %0, %22 : vector<1x4xi32>
    %24 = vector.broadcast %20 : f32 to vector<1x4xf32>
    %25 = arith.select %23, %24, %19 : vector<1x4xi1>, vector<1x4xf32>
    %c0_6 = arith.constant 0 : index
    %c0_7 = arith.constant 0 : index
    %26 = vector.load %arg3[%c0_6, %c0_7] : memref<1x4xf32, #tpu.memory_space<vmem>>, vector<1x4xf32>
    tpu.vector_store %arg3[%c0_6, %c0_7], %25 {strides = array<i32>} : memref<1x4xf32, #tpu.memory_space<vmem>>, vector<1x4xf32>,
    return
  }
}

</mosaic_0001>

<bundles_post_ra>
// kernel: tpu_custom_call.1
= control target key start
LH: loop header
LB: loop body
LE: loop exit
PB: predicated region body
PF: predicated region fallthrough
CT: control target
= control target key end

     0   :  { %8 = vsyncpa [#allocation5], 0  ;;  %s228_s0 = inlined_call_operand.vmem [shape: s32[4], index: 0, kind: input, shape index: {}]   ;;  %s229_s1 = inlined_call_operand.vmem [shape: f32[4], index: 1, kind: input, shape index: {}]   ;;  %s230_s2 = inlined_call_operand.hbm [shape: f32[1,4], index: 2, kind: input, shape index: {}, may-alias: {2,3}]   ;;  %s231_s3 = inlined_call_operand.hbm [shape: f32[1,4], index: 3, kind: output, shape index: {}, may-alias: {2,3}]  }
   0x1   :  { %9 = vsyncpa [#allocation7], 0 }
   0x2   :  { %10 = vsyncpa [#allocation3], 0 }
   0x3   :  { %11 = vsyncpa [#allocation4], 0  ;;  %s17_s14 = sshll.u32 %s228_s0, 4  ;;  %s26_s17 = sshll.u32 %s229_s1, 4  ;;  %s18_s14 = int_to_ptr.vmem [resolvable:$true] %s17_s14  ;;  %s27_s17 = int_to_ptr.vmem [resolvable:$true] %s26_s17 }
   0x4   :  { %s192_s18 = smov [#allocation2]   ;;  %s193_s19 = smov [#allocation6]  }
   0x5   :  { %20 = dma.vmem_to_smem %s18_s14, 16, %s192_s18, [#allocation5]  }
   0x6   :  { %29 = dma.vmem_to_smem %s27_s17, 16, %s193_s19, [#allocation7]  }
   0x7   :  { %s35_s22 = sshll.u32 %s230_s2, 4  ;;  %s194_s23 = smov [#allocation8]   ;;  %s36_s22 = int_to_ptr.hbm [resolvable:$true] %s35_s22 }
   0x8   :  { %s37_s24 = sshll.u32 %s194_s23, 4  ;;  %s38_s24 = int_to_ptr.vmem [resolvable:$true] %s37_s24 }
   0x9   :  { %40 = dma.hbm_to_vmem [thread:$0]  %s36_s22, 16, %s38_s24, [#allocation3]  }
   0xa   :  { %184 = dma.done.wait [#allocation5], 16  }
   0xb   :  { %185 = vsyncadd [#allocation5], 4294967280 }
   0xc   :  { %186 = dma.done.wait [#allocation7], 16  }
   0xd   :  { %187 = vsyncadd [#allocation7], 4294967280 }
   0xe   :  { %188 = dma.done.wait [#allocation3], 16  }
   0xf   :  { %189 = vsyncadd [#allocation3], 4294967280 }
  0x10   :  { %53 = sfence }
  0x11   :  { %v54_v0 = vlaneseq  ;;  %s57_s0 = sld [smem:[#allocation6]]  ;;  %v56_v2 = vld [vmem:[#allocation8] sm:$0x1]  ;;  %s195_s30 = smov [#allocation9]   ;;  %vm81_vm3 = vcmask 24576  }
  0x12   :  { %s58_s1 = sld [smem:[#allocation2]]  ;;  %s88_s4 = sshll.u32 %s195_s30, 4  ;;  %s89_s4 = int_to_ptr.vmem [resolvable:$true] %s88_s4 }
  0x13   :  { %s102_s25 = sld [smem:[#allocation6 + $0x1]]  ;;  %v55_v1 = vand.u32 127, %v54_v0  ;;  %s90_s7 = sshll.u32 %s231_s3, 4  ;;  %s91_s7 = int_to_ptr.hbm [resolvable:$true] %s90_s7 }
  0x14   :  { %s103_s26 = sld [smem:[#allocation2 + $0x1]] }
  0x15   :  { %s104_s27 = sld [smem:[#allocation6 + $0x2]] }
  0x16   :  { %s105_s2 = sld [smem:[#allocation2 + $0x2]] }
  0x17   :  { %v61_v3 = vstv %s57_s0  ;;  %s106_s28 = sld [smem:[#allocation6 + $0x3]] }
  0x18   :  { %v59_v4 = vstv %s58_s1  ;;  %s107_s29 = sld [smem:[#allocation2 + $0x3]] }
  0x19   :  { %vm60_vm0 = vcmp.eq.s32.totalorder %v55_v1, %v59_v4  ;;  %v67_v5 = vstv %s102_s25 }
  0x1a   :  { %v62_v6 = vsel %vm60_vm0, %v61_v3, %v56_v2  ;;  %v65_v7 = vstv %s103_s26 }
  0x1b   :  { %vm66_vm1 = vcmp.eq.s32.totalorder %v55_v1, %v65_v7  ;;  %v73_v8 = vstv %s104_s27 }
  0x1c   :  { %v68_v9 = vsel %vm66_vm1, %v67_v5, %v62_v6  ;;  %v71_v10 = vstv %s105_s2 }
  0x1d   :  { %vm72_vm2 = vcmp.eq.s32.totalorder %v55_v1, %v71_v10  ;;  %v79_v11 = vstv %s106_s28 }
  0x1e   :  { %v74_v12 = vsel %vm72_vm2, %v73_v8, %v68_v9  ;;  %v77_v13 = vstv %s107_s29 }
  0x1f   :  { %vm78_vm4 = vcmp.eq.s32.totalorder %v55_v1, %v77_v13 }
  0x20   :  { %v80_v14 = vsel %vm78_vm4, %v79_v11, %v74_v12 }
  0x21   :  { %82 = vst.msk [vmem:[#allocation9] sm:$0x1] %vm81_vm3, %v80_v14 }
  0x22   :  { %93 = dma.vmem_to_hbm [thread:$0]  %s89_s4, 16, %s91_s7, [#allocation4]  }
  0x23   :  { %190 = dma.done.wait [#allocation4], 16  }
  0x24   :  { %191 = vsyncadd [#allocation4], 4294967280 }
  0x25   :  { %98 = vsyncpa [#allocation3], 1 }
  0x26   :  { %99 = vsyncpa [#allocation4], 1 }
  0x27   :  { %100 = vsyncpa [#allocation5], 1 }
  0x28   :  { %101 = vsyncpa [#allocation7], 1 }

</bundles_post_ra>
